<compile_context>
chip_gen: v7x
topology: tpu7x:2x2x1
jax: 0.10.0
libtpu: 0.0.40
codegen_flags: <defaults>
</compile_context>

<pallas_src>
import functools

import jax
import jax.numpy as jnp
from jax import lax
from jax.experimental import pallas as pl
from jax.experimental.pallas import tpu as pltpu


def _supcon_clip_kernel(out0_ref, n1t_ref, ycol_ref, yrow_ref, invc_ref,
                        logits_ref, colnum_ref, s0_ref, *, inv_temp: float):
    # Normalize this block of out0 in f32; fold 1/temperature into the per-row
    # scale (rsqrt on the EUP) and cast to the MXU compute dtype only for the dot.
    x0 = out0_ref[...].astype(jnp.float32)                        # (TM, D)
    ss0 = jnp.sum(x0 * x0, axis=1, keepdims=True)                 # (TM, 1)
    inv0 = lax.rsqrt(jnp.maximum(ss0, 1e-24)) * inv_temp          # ~1/max(||x||,1e-12)/T
    n0 = (x0 * inv0).astype(n1t_ref.dtype)

    # (TM, D) @ (D, N) on the MXU, f32 accumulation. `logits` is consumed as a
    # single live value (store, exp, masked diff).
    logits = jnp.dot(n0, n1t_ref[...],
                     preferred_element_type=jnp.float32)          # (TM, N) f32
    logits_ref[...] = logits.astype(logits_ref.dtype)

    # Row log-sum-exp (no max-subtraction -- see module header).
    exp_logits = jnp.exp(logits)
    push0 = jnp.log(jnp.sum(exp_logits, axis=1, keepdims=True) + 1e-6)  # (TM, 1)

    # mask * (logits - push0) via one compare + one select (no materialized
    # float mask, no mask*logits multiply pass).
    eq = ycol_ref[...] == yrow_ref[...]                           # (TM, N) bool
    ml = jnp.where(eq, logits - push0, 0.0)                       # (TM, N) f32

    # Row direction: per-block sum of log_prob_0 (counts precomputed -> multiply).
    row = jnp.sum(ml, axis=1, keepdims=True) * invc_ref[...]      # (TM, 1)
    s0_ref[...] = jnp.sum(row, keepdims=True)[None]               # (1, 1, 1)

    # Column direction: sublane reduction offloaded to the MXU (skinny dot
    # contracting the TM axis); the /counts division happens in the epilogue.
    ones_col = jnp.ones((ml.shape[0], 1), jnp.float32)            # (TM, 1)
    colnum = lax.dot_general(ones_col, ml, (((0,), (0,)), ((), ())),
                             preferred_element_type=jnp.float32)  # (1, N)
    colnum_ref[...] = colnum[None]                                # (1, 1, N)


def _vmem_capacity_bytes() -> int:
    cap = 64 * 2**20   # conservative default (v7x per-TC VMEM)
    try:
        cap = int(getattr(pltpu.get_tpu_info(), "vmem_capacity_bytes", cap))
    except Exception:
        pass
    return cap


def supcon_loss_clip(out0, out1, y, temperature: float, lambda_0: float = 0.5,
                     *, block_m=None, use_bf16: bool = True,
                     logits_dtype=jnp.float32):
    """Pallas TPU forward of SupConLossCLIP. Returns (loss, logits, arange(N))."""
    if lambda_0 > 1 or lambda_0 < 0:
        raise ValueError('lambda_0 must be a float between 0 and 1.')
    n, d = out0.shape
    compute_dtype = jnp.bfloat16 if use_bf16 else jnp.float32
    c_item = jnp.dtype(compute_dtype).itemsize
    l_item = jnp.dtype(logits_dtype).itemsize

    # ---- wrapper-side prep (O(N*D), XLA-fused; free vs the O(N^2*D) kernel) ----
    n1 = out1 / jnp.maximum(jnp.linalg.norm(out1, axis=1, keepdims=True), 1e-12)
    n1t = n1.T.astype(compute_dtype)                              # (D, N)

    y = y.astype(jnp.int32)
    y_col = y.reshape(n, 1)
    y_row = y.reshape(1, n)
    # Per-sample class counts = tp_mask.sum(1); always >= 1 (the diagonal).
    # TODO(synk): use bincount when the label range is statically known instead
    # of the O(N^2) comparison (still trivial next to the kernel itself).
    counts = jnp.sum((y_col == y_row).astype(jnp.float32), axis=1, keepdims=True)
    inv_counts_col = 1.0 / counts                                 # (N, 1)

    # ---- generation-aware tile pick / VMEM limit ----
    vmem_cap = _vmem_capacity_bytes()
    budget = int(vmem_cap * 0.80)          # headroom for Mosaic internal scratch

    def _footprint(tm):
        resident = 2 * d * n * c_item + 4 * n * 4        # out1^T + y_row buffers
        per_block = (2 * tm * d * 4                      # out0 tiles (dbl-buffered)
                     + 4 * tm * 4                        # y_col + 1/count tiles
                     + 2 * tm * n * l_item               # logits out tiles
                     + 4 * tm * n * 4                    # live (TM,N) f32 temps
                     + 4 * n * 4)                        # per-block partial outs
        return resident + per_block + (2 << 20)

    if block_m is None:
        divisors = [c for c in (512, 256, 128, 64, 32, 16, 8) if n % c == 0]
        block_m = n
        for cand in divisors:                            # largest fitting tile
            if _footprint(cand) <= budget:
                block_m = cand
                break
        else:
            if divisors:                                 # best effort under pressure
                block_m = divisors[-1]
    if n % block_m != 0:
        block_m = n                                      # single full-height block
    nb = n // block_m

    vmem_limit = int(min(max(32 * 2**20, _footprint(block_m)),
                         int(vmem_cap * 0.85)))

    kernel = functools.partial(_supcon_clip_kernel,
                               inv_temp=1.0 / float(temperature))

    cost = pl.CostEstimate(
        flops=2 * n * n * d + 2 * n * n + 8 * n * n,
        transcendentals=n * n + 2 * n,
        bytes_accessed=(n * d * 4 + d * n * c_item + n * n * l_item + 6 * n * 4))

    logits, colnum_parts, s0_parts = pl.pallas_call(
        kernel,
        out_shape=(jax.ShapeDtypeStruct((n, n), logits_dtype),
                   jax.ShapeDtypeStruct((nb, 1, n), jnp.float32),
                   jax.ShapeDtypeStruct((nb, 1, 1), jnp.float32)),
        grid_spec=pltpu.PrefetchScalarGridSpec(
            num_scalar_prefetch=0,
            grid=(nb,),
            in_specs=[
                pl.BlockSpec((block_m, d), lambda i: (i, 0)),    # out0 tile
                # TODO(synk): pipeline_mode=pl.Buffered(1) would single-buffer the
                # two constant-index resident inputs below and reclaim ~d*n*c_item
                # bytes of VMEM on v7x once its support is confirmed in this jax.
                pl.BlockSpec((d, n), lambda i: (0, 0)),          # normalized out1^T
                pl.BlockSpec((block_m, 1), lambda i: (i, 0)),    # y column tile
                pl.BlockSpec((1, n), lambda i: (0, 0)),          # y row (resident)
                pl.BlockSpec((block_m, 1), lambda i: (i, 0)),    # 1/counts tile
            ],
            out_specs=(
                pl.BlockSpec((block_m, n), lambda i: (i, 0)),    # logits tile
                pl.BlockSpec((1, 1, n), lambda i: (i, 0, 0)),    # col-sum partial
                pl.BlockSpec((1, 1, 1), lambda i: (i, 0, 0)),    # row-sum partial
            )),
        compiler_params=pltpu.CompilerParams(
            dimension_semantics=("parallel",),
            vmem_limit_bytes=vmem_limit),
        cost_estimate=cost,
    )(out0, n1t, y_col, y_row, inv_counts_col)

    # Tiny JAX epilogue: merge per-block partials and finalize the scalar loss.
    s0 = jnp.sum(s0_parts)                                  # sum_i log_prob_0[i]
    colnum = jnp.sum(colnum_parts, axis=(0, 1))             # (N,)
    s1 = jnp.sum(colnum * inv_counts_col[:, 0])             # sum_i log_prob_1[i]
    loss = -(lambda_0 * s0 + (1.0 - lambda_0) * s1) / float(n)
    return loss, logits, jnp.arange(n)


def _reference(out0, out1, y, temperature, lambda_0):
    """Pure-JAX reference mirroring the PyTorch forward exactly (f32 matmul)."""
    n0 = out0 / jnp.maximum(jnp.linalg.norm(out0, axis=1, keepdims=True), 1e-12)
    n1 = out1 / jnp.maximum(jnp.linalg.norm(out1, axis=1, keepdims=True), 1e-12)
    logits = jnp.matmul(n0, n1.T, precision=lax.Precision.HIGHEST) / temperature
    exp_logits = jnp.exp(logits)
    y_p = y[None, :]
    tp_mask = (y_p == y_p.T).astype(jnp.float32)
    pull_0 = logits
    pull_1 = pull_0.T
    push_0 = jnp.log(exp_logits.sum(1, keepdims=True) + 1e-6)
    push_1 = push_0.T
    log_prob_0 = (tp_mask * (pull_0 - push_0)).sum(1) / tp_mask.sum(1)
    log_prob_1 = (tp_mask * (pull_1 - push_1)).sum(1) / tp_mask.sum(1)
    lambda_1 = 1.0 - lambda_0
    loss = lambda_0 * (-log_prob_0).mean() + lambda_1 * (-log_prob_1).mean()
    return loss, logits


if __name__ == "__main__":
    key = jax.random.PRNGKey(0)
    k0, k1, ky = jax.random.split(key, 3)

    N, D = 256, 128
    temperature = 0.1
    lambda_0 = 0.3

    out0 = jax.random.normal(k0, (N, D), dtype=jnp.float32)
    out1 = jax.random.normal(k1, (N, D), dtype=jnp.float32)
    y = jax.random.randint(ky, (N,), 0, 4, dtype=jnp.int32)

    ref_loss, ref_logits = _reference(out0, out1, y, temperature, lambda_0)

    # Fast path: bf16 MXU, multiple row blocks (exercises the parallel grid and
    # the JAX-side partial merge).
    loss, logits, idx = supcon_loss_clip(out0, out1, y, temperature, lambda_0,
                                         block_m=64, use_bf16=True)
    jax.block_until_ready((loss, logits, idx))
    assert jnp.allclose(loss, ref_loss, atol=1e-2, rtol=1e-2), (loss, ref_loss)
    assert jnp.allclose(logits, ref_logits, atol=3e-2, rtol=3e-2)
    assert jnp.array_equal(idx, jnp.arange(N))

    # Exact path: f32 matmul, auto block pick, f32 logits.
    loss32, logits32, _ = supcon_loss_clip(out0, out1, y, temperature, lambda_0,
                                           use_bf16=False)
    jax.block_until_ready((loss32, logits32))
    assert jnp.allclose(loss32, ref_loss, atol=2e-3, rtol=2e-3), (loss32, ref_loss)
    assert jnp.allclose(logits32, ref_logits, atol=2e-3, rtol=2e-3)

    # bf16-logits variant (halves the (N,N) HBM writeback for large N).
    loss_b, logits_b, _ = supcon_loss_clip(out0, out1, y, temperature, lambda_0,
                                           block_m=64, use_bf16=True,
                                           logits_dtype=jnp.bfloat16)
    jax.block_until_ready((loss_b, logits_b))
    assert jnp.allclose(loss_b, ref_loss, atol=1e-2, rtol=1e-2), (loss_b, ref_loss)
    assert jnp.allclose(logits_b.astype(jnp.float32), ref_logits,
                        atol=5e-2, rtol=5e-2)

    print("KERNEL_OK")
</pallas_src>

<mosaic_0001>
module attributes {stable_mosaic.version = 11 : i64} {
  func.func @_supcon_clip_kernel(%arg0: i32, %arg1: memref<64x128xf32, #tpu.memory_space<vmem>>, %arg2: memref<128x256xbf16, #tpu.memory_space<vmem>>, %arg3: memref<64x1xi32, #tpu.memory_space<vmem>>, %arg4: memref<1x256xi32, #tpu.memory_space<vmem>>, %arg5: memref<64x1xf32, #tpu.memory_space<vmem>>, %arg6: memref<64x256xf32, #tpu.memory_space<vmem>>, %arg7: memref<1x1x256xf32, #tpu.memory_space<vmem>>, %arg8: memref<1x1x1xf32, #tpu.memory_space<vmem>>) attributes {dimension_semantics = [#tpu.dimension_semantics<parallel>], iteration_bounds = array<i64: 4>, scalar_prefetch = 0 : i64, scratch_operands = 0 : i64, tpu.core_type = #tpu.core_type<tc>, window_params = [{transform_indices = @transform_0, window_bounds = array<i64: 64, 128>}, {pipeline_mode = #tpu.pipeline_mode<synchronous>, transform_indices = @transform_1, window_bounds = array<i64: 128, 256>}, {transform_indices = @transform_2, window_bounds = array<i64: 64, 1>}, {pipeline_mode = #tpu.pipeline_mode<synchronous>, transform_indices = @transform_3, window_bounds = array<i64: 1, 256>}, {transform_indices = @transform_4, window_bounds = array<i64: 64, 1>}, {transform_indices = @transform_5, window_bounds = array<i64: 64, 256>}, {transform_indices = @transform_6, window_bounds = array<i64: 1, 1, 256>}, {transform_indices = @transform_7, window_bounds = array<i64: 1, 1, 1>}]} {
    %c0 = arith.constant 0 : index
    %c0_0 = arith.constant 0 : index
    %0 = vector.load %arg1[%c0, %c0_0] : memref<64x128xf32, #tpu.memory_space<vmem>>, vector<64x128xf32>
    %1 = arith.mulf %0, %0 : vector<64x128xf32>
    %cst = arith.constant dense<0.000000e+00> : vector<64xf32>
    %2 = vector.multi_reduction <add>, %1, %cst [1] : vector<64x128xf32> to vector<64xf32>
    %3 = vector.shape_cast %2 : vector<64xf32> to vector<64x1xf32>
    %cst_1 = arith.constant 1.000000e-24 : f32
    %4 = vector.broadcast %cst_1 : f32 to vector<64x1xf32>
    %5 = arith.maximumf %3, %4 : vector<64x1xf32>
    %6 = math.rsqrt %5 : vector<64x1xf32>
    %cst_2 = arith.constant 1.000000e+01 : f32
    %7 = vector.broadcast %cst_2 : f32 to vector<64x1xf32>
    %8 = arith.mulf %6, %7 : vector<64x1xf32>
    %9 = vector.broadcast %8 : vector<64x1xf32> to vector<64x128xf32>
    %10 = arith.mulf %0, %9 : vector<64x128xf32>
    %11 = arith.truncf %10 : vector<64x128xf32> to vector<64x128xbf16>
    %c0_3 = arith.constant 0 : index
    %c0_4 = arith.constant 0 : index
    %12 = vector.load %arg2[%c0_3, %c0_4] : memref<128x256xbf16, #tpu.memory_space<vmem>>, vector<128x256xbf16>
    %cst_5 = arith.constant dense<0.000000e+00> : vector<64x256xf32>
    %13 = tpu.matmul %11, %12, %cst_5 {dimension_numbers = #tpu.dot_dimension_numbers<[1], [0], [0], [1], [0, 0, 1, 1], [], []>} : vector<64x128xbf16>, vector<128x256xbf16>, vector<64x256xf32> -> vector<64x256xf32>
    %c0_6 = arith.constant 0 : index
    %c0_7 = arith.constant 0 : index
    %14 = vector.load %arg6[%c0_6, %c0_7] : memref<64x256xf32, #tpu.memory_space<vmem>>, vector<64x256xf32>
    tpu.vector_store %arg6[%c0_6, %c0_7], %13 {strides = array<i32>} : memref<64x256xf32, #tpu.memory_space<vmem>>, vector<64x256xf32>,
    %15 = math.exp %13 : vector<64x256xf32>
    %cst_8 = arith.constant dense<0.000000e+00> : vector<64xf32>
    %16 = vector.multi_reduction <add>, %15, %cst_8 [1] : vector<64x256xf32> to vector<64xf32>
    %17 = vector.shape_cast %16 : vector<64xf32> to vector<64x1xf32>
    %cst_9 = arith.constant 9.99999997E-7 : f32
    %18 = vector.broadcast %cst_9 : f32 to vector<64x1xf32>
    %19 = arith.addf %17, %18 : vector<64x1xf32>
    %20 = math.log %19 : vector<64x1xf32>
    %c0_10 = arith.constant 0 : index
    %c0_11 = arith.constant 0 : index
    %21 = vector.load %arg3[%c0_10, %c0_11] : memref<64x1xi32, #tpu.memory_space<vmem>>, vector<64x1xi32>
    %c0_12 = arith.constant 0 : index
    %c0_13 = arith.constant 0 : index
    %22 = vector.load %arg4[%c0_12, %c0_13] : memref<1x256xi32, #tpu.memory_space<vmem>>, vector<1x256xi32>
    %23 = vector.broadcast %21 : vector<64x1xi32> to vector<64x256xi32>
    %24 = vector.broadcast %22 : vector<1x256xi32> to vector<64x256xi32>
    %25 = arith.cmpi eq, %23, %24 : vector<64x256xi32>
    %26 = vector.broadcast %20 : vector<64x1xf32> to vector<64x256xf32>
    %27 = arith.subf %13, %26 : vector<64x256xf32>
    %cst_14 = arith.constant 0.000000e+00 : f32
    %28 = vector.broadcast %cst_14 : f32 to vector<64x256xf32>
    %29 = arith.select %25, %27, %28 : vector<64x256xi1>, vector<64x256xf32>
    %cst_15 = arith.constant dense<0.000000e+00> : vector<64xf32>
    %30 = vector.multi_reduction <add>, %29, %cst_15 [1] : vector<64x256xf32> to vector<64xf32>
    %31 = vector.shape_cast %30 : vector<64xf32> to vector<64x1xf32>
    %c0_16 = arith.constant 0 : index
    %c0_17 = arith.constant 0 : index
    %32 = vector.load %arg5[%c0_16, %c0_17] : memref<64x1xf32, #tpu.memory_space<vmem>>, vector<64x1xf32>
    %33 = arith.mulf %31, %32 : vector<64x1xf32>
    %34 = vector.shape_cast %33 : vector<64x1xf32> to vector<1x64x1xf32>
    %cst_18 = arith.constant dense<0.000000e+00> : vector<1xf32>
    %35 = vector.multi_reduction <add>, %34, %cst_18 [1, 2] : vector<1x64x1xf32> to vector<1xf32>
    %36 = vector.shape_cast %35 : vector<1xf32> to vector<1x1x1xf32>
    %37 = vector.extract %36[0, 0, 0] : f32 from vector<1x1x1xf32>
    %38 = vector.broadcast %37 : f32 to vector<1x1xf32>
    %39 = vector.shape_cast %38 : vector<1x1xf32> to vector<1x1x1xf32>
    %c0_19 = arith.constant 0 : index
    %c0_20 = arith.constant 0 : index
    %c0_21 = arith.constant 0 : index
    %40 = vector.load %arg8[%c0_19, %c0_20, %c0_21] : memref<1x1x1xf32, #tpu.memory_space<vmem>>, vector<1x1x1xf32>
    tpu.vector_store %arg8[%c0_19, %c0_20, %c0_21], %39 {strides = array<i32>} : memref<1x1x1xf32, #tpu.memory_space<vmem>>, vector<1x1x1xf32>,
    %cst_22 = arith.constant 1.000000e+00 : f32
    %41 = vector.broadcast %cst_22 : f32 to vector<64x1xf32>
    %cst_23 = arith.constant dense<0.000000e+00> : vector<1x256xf32>
    %42 = tpu.matmul %41, %29, %cst_23 {dimension_numbers = #tpu.dot_dimension_numbers<[0], [0], [1], [1], [0, 1, 1, 1], [], []>} : vector<64x1xf32>, vector<64x256xf32>, vector<1x256xf32> -> vector<1x256xf32>
    %43 = vector.shape_cast %42 : vector<1x256xf32> to vector<1x1x256xf32>
    %c0_24 = arith.constant 0 : index
    %c0_25 = arith.constant 0 : index
    %c0_26 = arith.constant 0 : index
    %44 = vector.load %arg7[%c0_24, %c0_25, %c0_26] : memref<1x1x256xf32, #tpu.memory_space<vmem>>, vector<1x1x256xf32>
    tpu.vector_store %arg7[%c0_24, %c0_25, %c0_26], %43 {strides = array<i32>} : memref<1x1x256xf32, #tpu.memory_space<vmem>>, vector<1x1x256xf32>,
    return
  }
  func.func @transform_0(%arg0: i32) -> (i32, i32) {
    %c0_i32 = arith.constant 0 : i32
    %c0_i32_0 = arith.constant 0 : i32
    return %arg0, %c0_i32 : i32, i32
  }
  func.func @transform_1(%arg0: i32) -> (i32, i32) {
    %c0_i32 = arith.constant 0 : i32
    %c0_i32_0 = arith.constant 0 : i32
    %c0_i32_1 = arith.constant 0 : i32
    return %c0_i32, %c0_i32_0 : i32, i32
  }
  func.func @transform_2(%arg0: i32) -> (i32, i32) {
    %c0_i32 = arith.constant 0 : i32
    %c0_i32_0 = arith.constant 0 : i32
    return %arg0, %c0_i32 : i32, i32
  }
  func.func @transform_3(%arg0: i32) -> (i32, i32) {
    %c0_i32 = arith.constant 0 : i32
    %c0_i32_0 = arith.constant 0 : i32
    %c0_i32_1 = arith.constant 0 : i32
    return %c0_i32, %c0_i32_0 : i32, i32
  }
  func.func @transform_4(%arg0: i32) -> (i32, i32) {
    %c0_i32 = arith.constant 0 : i32
    %c0_i32_0 = arith.constant 0 : i32
    return %arg0, %c0_i32 : i32, i32
  }
  func.func @transform_5(%arg0: i32) -> (i32, i32) {
    %c0_i32 = arith.constant 0 : i32
    %c0_i32_0 = arith.constant 0 : i32
    return %arg0, %c0_i32 : i32, i32
  }
  func.func @transform_6(%arg0: i32) -> (i32, i32, i32) {
    %c0_i32 = arith.constant 0 : i32
    %c0_i32_0 = arith.constant 0 : i32
    %c0_i32_1 = arith.constant 0 : i32
    return %arg0, %c0_i32, %c0_i32_0 : i32, i32, i32
  }
  func.func @transform_7(%arg0: i32) -> (i32, i32, i32) {
    %c0_i32 = arith.constant 0 : i32
    %c0_i32_0 = arith.constant 0 : i32
    %c0_i32_1 = arith.constant 0 : i32
    return %arg0, %c0_i32, %c0_i32_0 : i32, i32, i32
  }
}

</mosaic_0001>

<bundles_post_ra>
// kernel: tpu_custom_call.1
= control target key start
LH: loop header
LB: loop body
LE: loop exit
PB: predicated region body
PF: predicated region fallthrough
CT: control target
= control target key end

     0   :  { %13 = vsyncpa [#allocation3], 0  ;;  %s2003_s0 = inlined_call_operand.vmem [shape: f32[256,128], index: 0, kind: input, shape index: {}]   ;;  %s2004_s1 = inlined_call_operand.vmem [shape: bf16[128,256], index: 1, kind: input, shape index: {}]   ;;  %s2005_s2 = inlined_call_operand.vmem [shape: s32[256,1], index: 2, kind: input, shape index: {}]   ;;  %s2006_s3 = inlined_call_operand.vmem [shape: s32[1,256], index: 3, kind: input, shape index: {}]   ;;  %s2007_s4 = inlined_call_operand.vmem [shape: f32[256,1], index: 4, kind: input, shape index: {}]   ;;  %s2008_s5 = inlined_call_operand.hbm [shape: f32[256,256], index: 5, kind: output, shape index: {0}]   ;;  %s2009_s6 = inlined_call_operand.hbm [shape: f32[4,1,256], index: 6, kind: output, shape index: {1}]   ;;  %s2010_s7 = inlined_call_operand.vmem [shape: f32[4,1,1], index: 7, kind: output, shape index: {2}]  }
   0x1   :  { %15 = vsyncpa [#allocation3 + $0x1], 0 }
   0x2   :  { %16 = vsyncpa [#allocation5], 0 }
   0x3   :  { %18 = vsyncpa [#allocation5 + $0x1], 0  ;;  %s1524_s24 = smov 0   ;;  %s1526_s25 = smov 0  }
   0x4   :  { %s1528_s26 = smov 0   ;;  %s1530_s27 = smov 0  }
   0x5 LB: > { %s1545_s28 = sadd.s32 4294967295, %s1474_s27   ;;  %s1141_s29 = sadd.s32 4294967294, %s1474_s27   ;;  %s1474_s27 = sphi %s1530_s27, %s2024_s27   ;;  %s1470_s26 = sphi %s1528_s26, %s2023_s26   ;;  %s1466_s25 = sphi %s1526_s25, %s2022_s25   ;;  %s1462_s24 = sphi %s1524_s24, %s2021_s24  }
   0x6   : > { %s1549_s30 = sadd.s32 1, %s1474_s27   ;;  %s151_s8 = sadd.s32 1, %s1470_s26 }
   0x7   : > { %s148_s9 = ssub.s32 %s1474_s27, %s1549_s30  ;;  %p161_p0 = scmp.ne.s32.totalorder %s1470_s26, %s1466_s25 }
   0x8   : > { %p149_p1 = scmp.eq.s32.totalorder %s148_s9, 0  ;;  %p162_p2 = scmp.eq.s32.totalorder %s1545_s28, 3 }
   0x9   : > { %p167_p3 = scmp.ne.s32.totalorder %s1466_s25, %s1462_s24  ;;  %p168_p4 = scmp.eq.s32.totalorder %s1141_s29, 3 }
   0xa   : > { %s1560_s10 = scalar_select %p149_p1, %s1470_s26, %s151_s8  }
   0xb   : > { %p1562_p5 = por %p162_p2, %p161_p0  ;;  %p1566_p6 = por %p168_p4, %p167_p3 }
   0xc   : > { %p1144_p7 = scmp.ge.s32.totalorder %s1474_s27, 1  ;;  %p271_p8 = scmp.lt.s32.totalorder %s1474_s27, 5 }
   0xe   : > { %p272_p9 = pnand %p1144_p7, %p271_p8 }
   0xf   : > { %s1147_s13 = sshll.u32 (!%p272_p9), %s1545_s28, 3  ;;  %v1292_v0 = vld [vmem:[%s2004_s1 + $0x4] ss:$8 sps:$4 sm:$0xff] (!%p272_p9)   ;;  %v1294_v1 = vld [vmem:[%s2004_s1] ss:$8 sps:$4 sm:$0xff] (!%p272_p9)   ;;  %v1476_v32 = vmov (!%p272_p9), 0  }
  0x10   : > { %275 = sbr.rel (%p272_p9) target bundleno = 1030 (0x406), region = 40  ;;  %p322_p10 = scmp.lt.s32.totalorder (!%p272_p9), %s1147_s13, 31  ;;  %508 = vmatprep.subr.bf16.mxu0 (!%p272_p9), %v1292_v0  ;;  %1222 = vmatprep.subr.bf16.mxu1 (!%p272_p9), %v1292_v0  ;;  %v1295_v2 = vld [vmem:[%s2004_s1 + $0x14] ss:$8 sps:$4 sm:$0xff] (!%p272_p9)   ;;  %v1297_v3 = vld [vmem:[%s2004_s1 + $0x10] ss:$8 sps:$4 sm:$0xff] (!%p272_p9)  }
  0x11   : > { %509 = vmatpush1.bf16.msra.mxu0 (!%p272_p9), %v1294_v1  ;;  %1230 = vmatpush1.bf16.msra.mxu1 (!%p272_p9), %v1294_v1  ;;  %v1298_v4 = vld [vmem:[%s2004_s1 + $0x24] ss:$8 sps:$4 sm:$0xff] (!%p272_p9)   ;;  %v1300_v21 = vld [vmem:[%s2004_s1 + $0x20] ss:$8 sps:$4 sm:$0xff] (!%p272_p9)   ;;  %v1301_v22 = vld [vmem:[%s2004_s1 + $0x34] ss:$8 sps:$4 sm:$0xff] (!%p272_p9)  }
  0x12   : > { %510 = vmatprep.subr.bf16.mxu0 (!%p272_p9), %v1295_v2  ;;  %1223 = vmatprep.subr.bf16.mxu1 (!%p272_p9), %v1295_v2  ;;  %v1303_v23 = vld [vmem:[%s2004_s1 + $0x30] ss:$8 sps:$4 sm:$0xff] (!%p272_p9)   ;;  %v1304_v24 = vld [vmem:[%s2004_s1 + $0x44] ss:$8 sps:$4 sm:$0xff] (!%p272_p9)   ;;  %v1306_v25 = vld [vmem:[%s2004_s1 + $0x40] ss:$8 sps:$4 sm:$0xff] (!%p272_p9)  }
  0x13   : > { %v1307_v26 = vld [vmem:[%s2004_s1 + $0x54] ss:$8 sps:$4 sm:$0xff] (!%p272_p9)   ;;  %v1309_v27 = vld [vmem:[%s2004_s1 + $0x50] ss:$8 sps:$4 sm:$0xff] (!%p272_p9)   ;;  %v1310_v28 = vld [vmem:[%s2004_s1 + $0x64] ss:$8 sps:$4 sm:$0xff] (!%p272_p9)   ;;  %540 = vmatprep.mubr.bf16.mxu0 (!%p272_p9), %v1476_v32  ;;  %560 = vmatprep.mubr.bf16.mxu1 (!%p272_p9), %v1476_v32 }
  0x14   : > { %v1312_v29 = vld [vmem:[%s2004_s1 + $0x60] ss:$8 sps:$4 sm:$0xff] (!%p272_p9)   ;;  %v1313_v30 = vld [vmem:[%s2004_s1 + $0x74] ss:$8 sps:$4 sm:$0xff] (!%p272_p9)   ;;  %v1315_v31 = vld [vmem:[%s2004_s1 + $0x70] ss:$8 sps:$4 sm:$0xff] (!%p272_p9)   ;;  %1291 = vset.pattern.permute.xlu1 (!%p272_p9), %v1476_v32  ;;  %1290 = vset.pattern.permute.xlu0 (!%p272_p9), %v1476_v32 }
  0x15   : > { %511 = vmatpush1.bf16.msra.mxu0 (!%p272_p9), %v1297_v3  ;;  %1231 = vmatpush1.bf16.msra.mxu1 (!%p272_p9), %v1297_v3  ;;  %s1668_s23 = sand.u32 (!%p272_p9), 1, %s1466_s25   ;;  %s1196_s21 = sshll.u32 (!%p272_p9), %s1545_s28, 11 }
  0x16   : > { %512 = vmatprep.subr.bf16.mxu0 (!%p272_p9), %v1298_v4  ;;  %1224 = vmatprep.subr.bf16.mxu1 (!%p272_p9), %v1298_v4  ;;  %s1145_s8 = sshll.u32 (!%p272_p9), %s1668_s23, 7 }
  0x17   : > { %s2026_s13 = smov (!%p322_p10, %s1147_s13), 31  ;;  %s1673_s9 = scalar_lea.vmem [#allocation2], %s1145_s8 }
  0x18   : > { %s1588_s29 = sshll.u32 %s2026_s13, 3  ;;  %s987_s22 = sshll.u32 %s1673_s9, 4  ;;  %s1922_s22 = int_to_ptr.vmem [resolvable:$true] %s987_s22 }
  0x19   : > { %s325_s14 = scalar_lea.vmem %s2003_s0, %s1588_s29  ;;  %513 = vmatpush1.bf16.msra.mxu0 %v1300_v21  ;;  %1232 = vmatpush1.bf16.msra.mxu1 %v1300_v21  ;;  %s331_s15 = scalar_lea.vmem %s2005_s2, %s1588_s29 }
  0x1a   : > { %v1594_v5 = vld [vmem:[%s325_s14 + $0x10] sm:$0xff]  ;;  %v1596_v6 = vld [vmem:[%s325_s14] sm:$0xff]  ;;  %v1598_v7 = vld [vmem:[%s325_s14 + $0x18] sm:$0xff]  ;;  %514 = vmatprep.subr.bf16.mxu0 %v1301_v22  ;;  %1225 = vmatprep.subr.bf16.mxu1 %v1301_v22  ;;  %s337_s20 = scalar_lea.vmem %s2007_s4, %s1588_s29  ;;  %s1146_s29 = sshll.u32 %s1668_s23, 1 }
  0x1b   : > { %v354_v8 = vmul.f32 %v1594_v5, %v1594_v5  ;;  %v352_v9 = vmul.f32 %v1596_v6, %v1596_v6  ;;  %v1604_v10 = vld [vmem:[%s325_s14 + $0x8] sm:$0xff]  ;;  %v355_v11 = vmul.f32 %v1598_v7, %v1598_v7  ;;  %v1612_v14 = vld [vmem:[%s325_s14 + $0x20] sm:$0xff]  ;;  %v1618_v17 = vld [vmem:[%s325_s14 + $0x38] sm:$0xff]  ;;  %s1920_s13 = scalar_lea.hbm %s2008_s5, %s1196_s21  ;;  %s1380_s16 = scalar_lea.vmem %s1922_s22, 2048 }
  0x1c   : > { %v353_v12 = vmul.f32 %v1604_v10, %v1604_v10  ;;  %v1610_v13 = vld [vmem:[%s325_s14 + $0x28] sm:$0xff]  ;;  %v356_v16 = vmul.f32 %v1612_v14, %v1612_v14  ;;  %v1620_v18 = vld [vmem:[%s325_s14 + $0x30] sm:$0xff]  ;;  %v359_v19 = vmul.f32 %v1618_v17, %v1618_v17  ;;  %p1381_p11 = scmp.ne.s32.totalorder %s1922_s22, %s1380_s16 }
  0x1d   : > { %364 = vadd.xlane.f32.xlu1 %v354_v8  ;;  %360 = vadd.xlane.f32.xlu0 %v352_v9  ;;  %v357_v15 = vmul.f32 %v1610_v13, %v1610_v13  ;;  %v358_v20 = vmul.f32 %v1620_v18, %v1620_v18 }
  0x1e   : > { %515 = vmatpush1.bf16.msra.mxu0 %v1303_v23  ;;  %1233 = vmatpush1.bf16.msra.mxu1 %v1303_v23  ;;  %p1382_p12 = pnand %p1381_p11, %p1562_p5 }
  0x1f   : > { %516 = vmatprep.subr.bf16.mxu0 %v1304_v24  ;;  %1226 = vmatprep.subr.bf16.mxu1 %v1304_v24 }
  0x20   : > { %p1383_p13 = pneg %p1382_p12 }
  0x21   : > { %366 = vadd.xlane.f32.xlu1 %v355_v11  ;;  %362 = vadd.xlane.f32.xlu0 %v353_v12 }
  0x22   : > { %517 = vmatpush1.bf16.msra.mxu0 %v1306_v25  ;;  %1234 = vmatpush1.bf16.msra.mxu1 %v1306_v25 }
  0x23   : > { %518 = vmatprep.subr.bf16.mxu0 %v1307_v26  ;;  %1227 = vmatprep.subr.bf16.mxu1 %v1307_v26 }
  0x25   : > { %370 = vadd.xlane.f32.xlu1 %v357_v15  ;;  %368 = vadd.xlane.f32.xlu0 %v356_v16 }
  0x26   : > { %519 = vmatpush1.bf16.msra.mxu0 %v1309_v27  ;;  %1235 = vmatpush1.bf16.msra.mxu1 %v1309_v27 }
  0x27   : > { %520 = vmatprep.subr.bf16.mxu0 %v1310_v28  ;;  %1228 = vmatprep.subr.bf16.mxu1 %v1310_v28 }
  0x29   : > { %374 = vadd.xlane.f32.xlu1 %v359_v19  ;;  %372 = vadd.xlane.f32.xlu0 %v358_v20 }
  0x2a   : > { %521 = vmatpush1.bf16.msra.mxu0 %v1312_v29  ;;  %1236 = vmatpush1.bf16.msra.mxu1 %v1312_v29 }
  0x2b   : > { %522 = vmatprep.subr.bf16.mxu0 %v1313_v30  ;;  %1229 = vmatprep.subr.bf16.mxu1 %v1313_v30 }
  0x2e   : > { %523 = vmatpush1.bf16.msra.mxu0 %v1315_v31  ;;  %1237 = vmatpush1.bf16.msra.mxu1 %v1315_v31 }
  0xaa   : > { %v365_v33 = vpop.xlane.xlu1 %364  ;;  %v361_v34 = vpop.xlane.xlu0 %360 }
  0xab   : > { %v376_v35 = vmax.f32 %v361_v34, 1e-24  ;;  %v378_v38 = vmax.f32 %v365_v33, 1e-24 }
  0xad   : > { %1316 = vrsqrt.f32 %v376_v35 }
  0xae   : > { %v367_v36 = vpop.xlane.xlu1 %366  ;;  %v363_v37 = vpop.xlane.xlu0 %362 }
  0xaf   : > { %v377_v39 = vmax.f32 %v363_v37, 1e-24  ;;  %v379_v40 = vmax.f32 %v367_v36, 1e-24 }
  0xb1   : > { %1318 = vrsqrt.f32 %v377_v39 }
  0xb2   : > { %v371_v41 = vpop.xlane.xlu1 %370  ;;  %v369_v42 = vpop.xlane.xlu0 %368  ;;  %1320 = vrsqrt.f32 %v378_v38 }
  0xb3   : > { %v381_v43 = vmax.f32 %v371_v41, 1e-24  ;;  %v380_v44 = vmax.f32 %v369_v42, 1e-24  ;;  %1322 = vrsqrt.f32 %v379_v40 }
  0xb5   : > { %1324 = vrsqrt.f32 %v381_v43 }
  0xb6   : > { %1326 = vrsqrt.f32 %v380_v44  ;;  %v375_v45 = vpop.xlane.xlu1 %374  ;;  %v373_v46 = vpop.xlane.xlu0 %372 }
  0xb7   : > { %v383_v47 = vmax.f32 %v375_v45, 1e-24  ;;  %v382_v48 = vmax.f32 %v373_v46, 1e-24  ;;  %v1317_v49 = vpop.eup %1316 }
  0xb8   : > { %v392_v50 = vmul.f32 10.0, %v1317_v49 }
  0xb9   : > { %1328 = vrsqrt.f32 %v383_v47 }
  0xba   : > { %1330 = vrsqrt.f32 %v382_v48  ;;  %v400_v56 = vmul.f32 %v392_v50, %v1596_v6 }
  0xbb   : > { %v1319_v51 = vpop.eup %1318 }
  0xbc   : > { %v1321_v52 = vpop.eup %1320  ;;  %v393_v53 = vmul.f32 10.0, %v1319_v51 }
  0xbd   : > { %v1323_v54 = vpop.eup %1322  ;;  %v394_v1 = vmul.f32 10.0, %v1321_v52 }
  0xbe   : > { %v401_v57 = vmul.f32 %v393_v53, %v1604_v10  ;;  %v395_v60 = vmul.f32 10.0, %v1323_v54 }
  0xbf   : > { %v1325_v55 = vpop.eup %1324  ;;  %v402_v10 = vmul.f32 %v394_v1, %v1594_v5 }
  0xc0   : > { %v1327_v58 = vpop.eup %1326  ;;  %v397_v59 = vmul.f32 10.0, %v1325_v55  ;;  %v408_v62 = vpack.c.bf16 %v401_v57, %v400_v56  ;;  %v403_v6 = vmul.f32 %v395_v60, %v1598_v7 }
  0xc1   : > { %v396_v61 = vmul.f32 10.0, %v1327_v58 }
  0xc2   : > { %v405_v63 = vmul.f32 %v397_v59, %v1610_v13  ;;  %541 = vmatmul.mubr.bf16.vlgmr.msra.gmra.mrb[0].mxu0 %v408_v62  ;;  %v409_v13 = vpack.c.bf16 %v403_v6, %v402_v10  ;;  %v678_v6 = vld [vmem:[%s331_s15 + $0x8] sm:$0xff]  ;;  %v677_v10 = vld [vmem:[%s331_s15] sm:$0xff] }
  0xc3   : > { %v1329_v0 = vpop.eup %1328  ;;  %v404_v2 = vmul.f32 %v396_v61, %v1612_v14  ;;  %550 = vmatprep.mubr.bf16.mxu0 %v1476_v32 }
  0xc4   : > { %v1331_v3 = vpop.eup %1330  ;;  %v399_v4 = vmul.f32 10.0, %v1329_v0 }
  0xc5   : > { %v398_v8 = vmul.f32 10.0, %v1331_v3  ;;  %v410_v9 = vpack.c.bf16 %v405_v63, %v404_v2 }
  0xc6   : > { %v407_v11 = vmul.f32 %v399_v4, %v1618_v17 }
  0xc7   : > { %v406_v12 = vmul.f32 %v398_v8, %v1620_v18  ;;  %561 = vmatmul.mubr.bf16.vlgmr.msra.gmra.mrb[0].mxu1 %v410_v9  ;;  %v679_v8 = vld [vmem:[%s331_s15 + $0x10] sm:$0xff]  ;;  %v680_v9 = vld [vmem:[%s331_s15 + $0x18] sm:$0xff] }
  0xc8   : > { %570 = vmatprep.mubr.bf16.mxu1 %v1476_v32 }
  0xc9   : > { %v411_v14 = vpack.c.bf16 %v407_v11, %v406_v12  ;;  %v681_v11 = vld [vmem:[%s331_s15 + $0x20] sm:$0xff]  ;;  %v682_v12 = vld [vmem:[%s331_s15 + $0x28] sm:$0xff] }
  0xca   : > { %551 = vmatmul.mubr.bf16.gmra.mrb[4].mxu0 %v409_v13  ;;  %v683_v13 = vld [vmem:[%s331_s15 + $0x30] sm:$0xff] }
  0xcf   : > { %571 = vmatmul.mubr.bf16.gmra.mrb[4].mxu1 %v411_v14  ;;  %v684_v14 = vld [vmem:[%s331_s15 + $0x38] sm:$0xff]  ;;  %s965_s15 = scalar_lea.sflag [#allocation3], %s1668_s23 }
 0x195   : > { %v1671_v15 = vpop.f32.mrb[0].mxu0 }
 0x196   : > { %581 = vst [vmem:[%s1673_s9] sm:$0xff] %v1671_v15  ;;  %v597_v5 = vmul.f32 1.442695, %v1671_v15  ;;  %v1678_v7 = vpop.f32.mrb[1].mxu0 }
 0x197   : > { %582 = vst [vmem:[%s1673_s9 + $0x8] sm:$0xff] %v1678_v7  ;;  %v599_v16 = vmul.f32 1.442695, %v1678_v7  ;;  %v1683_v17 = vpop.f32.mrb[2].mxu0 }
 0x198   : > { %1332 = vpow2.f32 %v597_v5  ;;  %583 = vst [vmem:[%s1673_s9 + $0x10] sm:$0xff] %v1683_v17  ;;  %v601_v18 = vmul.f32 1.442695, %v1683_v17  ;;  %v1688_v19 = vpop.f32.mrb[3].mxu0  ;;  %v1477_v5 = vmov 1.0  }
 0x199   : > { %1334 = vpow2.f32 %v599_v16  ;;  %584 = vst [vmem:[%s1673_s9 + $0x18] sm:$0xff] %v1688_v19  ;;  %v603_v20 = vmul.f32 1.442695, %v1688_v19 }
 0x19a   : > { %v1693_v21 = vpop.f32.mrb[0].mxu1  ;;  %1336 = vpow2.f32 %v601_v18 }
 0x19b   : > { %589 = vst [vmem:[%s1673_s9 + $0x40] sm:$0xff] %v1693_v21  ;;  %v613_v22 = vmul.f32 1.442695, %v1693_v21  ;;  %v1698_v23 = vpop.f32.mrb[1].mxu1  ;;  %1338 = vpow2.f32 %v603_v20  ;;  %v710_v20 = vlaneseq }
 0x19c   : > { %590 = vst [vmem:[%s1673_s9 + $0x48] sm:$0xff] %v1698_v23  ;;  %v615_v24 = vmul.f32 1.442695, %v1698_v23  ;;  %v1703_v25 = vpop.f32.mrb[2].mxu1 }
 0x19d   : > { %1340 = vpow2.f32 %v613_v22  ;;  %591 = vst [vmem:[%s1673_s9 + $0x50] sm:$0xff] %v1703_v25  ;;  %v617_v26 = vmul.f32 1.442695, %v1703_v25  ;;  %v1708_v27 = vpop.f32.mrb[3].mxu1  ;;  %v1713_v29 = vpop.f32.mrb[4].mxu0 }
 0x19e   : > { %1342 = vpow2.f32 %v615_v24  ;;  %592 = vst [vmem:[%s1673_s9 + $0x58] sm:$0xff] %v1708_v27  ;;  %v619_v28 = vmul.f32 1.442695, %v1708_v27  ;;  %585 = vst [vmem:[%s1673_s9 + $0x20] sm:$0xff] %v1713_v29  ;;  %v605_v30 = vmul.f32 1.442695, %v1713_v29 }
 0x19f   : > { %1344 = vpow2.f32 %v617_v26  ;;  %v1718_v31 = vpop.f32.mrb[5].mxu0 }
 0x1a0   : > { %1346 = vpow2.f32 %v619_v28  ;;  %586 = vst [vmem:[%s1673_s9 + $0x28] sm:$0xff] %v1718_v31  ;;  %v607_v32 = vmul.f32 1.442695, %v1718_v31  ;;  %v1723_v33 = vpop.f32.mrb[6].mxu0 }
 0x1a1   : > { %1348 = vpow2.f32 %v605_v30  ;;  %587 = vst [vmem:[%s1673_s9 + $0x30] sm:$0xff] %v1723_v33  ;;  %v609_v34 = vmul.f32 1.442695, %v1723_v33  ;;  %v1728_v35 = vpop.f32.mrb[7].mxu0  ;;  %v1760_v30 = vshrl.u32 %v710_v20, 7 }
 0x1a2   : > { %1350 = vpow2.f32 %v607_v32  ;;  %588 = vst [vmem:[%s1673_s9 + $0x38] sm:$0xff] %v1728_v35  ;;  %v611_v36 = vmul.f32 1.442695, %v1728_v35  ;;  %v1733_v37 = vpop.f32.mrb[4].mxu1  ;;  %v1333_v38 = vpop.eup %1332 }
 0x1a3   : > { %1352 = vpow2.f32 %v609_v34  ;;  %593 = vst [vmem:[%s1673_s9 + $0x60] sm:$0xff] %v1733_v37  ;;  %v621_v39 = vmul.f32 1.442695, %v1733_v37  ;;  %v1738_v40 = vpop.f32.mrb[5].mxu1  ;;  %v1335_v41 = vpop.eup %1334 }
 0x1a4   : > { %1354 = vpow2.f32 %v611_v36  ;;  %594 = vst [vmem:[%s1673_s9 + $0x68] sm:$0xff] %v1738_v40  ;;  %v623_v42 = vmul.f32 1.442695, %v1738_v40  ;;  %v1743_v43 = vpop.f32.mrb[6].mxu1  ;;  %v1337_v44 = vpop.eup %1336  ;;  %v629_v45 = vadd.f32 %v1335_v41, %v1333_v38  ;;  %v716_v41 = vsub.s32 1, %v1760_v30 }
 0x1a5   : > { %1356 = vpow2.f32 %v621_v39  ;;  %595 = vst [vmem:[%s1673_s9 + $0x70] sm:$0xff] %v1743_v43  ;;  %v625_v46 = vmul.f32 1.442695, %v1743_v43  ;;  %v1748_v47 = vpop.f32.mrb[7].mxu1  ;;  %v1339_v48 = vpop.eup %1338  ;;  %v712_v39 = vsub.s32 0, %v1760_v30 }
 0x1a6   : > { %1358 = vpow2.f32 %v623_v42  ;;  %596 = vst [vmem:[%s1673_s9 + $0x78] sm:$0xff] %v1748_v47  ;;  %v627_v49 = vmul.f32 1.442695, %v1748_v47  ;;  %630 = vadd.xlane.f32.xlu0 %v629_v45  ;;  %v632_v51 = vadd.f32 %v1339_v48, %v1337_v44  ;;  %v685_v42 = vld [vmem:[%s2006_s3] sm:$0x3]  ;;  %s1480_s9 = smov [#allocation2]  }
 0x1a7   : > { %v1341_v50 = vpop.eup %1340  ;;  %1360 = vpow2.f32 %v625_v46  ;;  %v1769_v48 = vrot.slane %v685_v42, %v712_v39  ;;  %s1384_s17 = sshll.u32 %s1480_s9, 4  ;;  %s1385_s17 = int_to_ptr.vmem [resolvable:$false] %s1384_s17 }
 0x1a8   : > { %v1343_v52 = vpop.eup %1342  ;;  %1362 = vpow2.f32 %v627_v49  ;;  %633 = vadd.xlane.f32.xlu1 %v632_v51  ;;  %v1771_v49 = vrot.slane %v685_v42, %v716_v41  ;;  %v797_v41 = vld [vmem:[%s337_s20 + $0x38] sm:$0xff]  ;;  %s1386_s18 = scalar_lea.vmem %s1385_s17, 4096  ;;  %p1387_p0 = scmp.lt.s32.totalorder %s1922_s22, %s1385_s17 }
 0x1a9   : > { %v1345_v53 = vpop.eup %1344  ;;  %v641_v54 = vadd.f32 %v1343_v52, %v1341_v50  ;;  %p1388_p1 = scmp.lt.s32.totalorder %s1386_s18, %s1380_s16 }
 0x1aa   : > { %v1347_v55 = vpop.eup %1346 }
 0x1ab   : > { %v1349_v56 = vpop.eup %1348  ;;  %642 = vadd.xlane.f32.xlu0 %v641_v54  ;;  %v644_v57 = vadd.f32 %v1347_v55, %v1345_v53  ;;  %p1389_p2 = por %p1388_p1, %p1387_p0 }
 0x1ac   : > { %v1351_v58 = vpop.eup %1350 }
 0x1ad   : > { %v1353_v59 = vpop.eup %1352  ;;  %645 = vadd.xlane.f32.xlu1 %v644_v57  ;;  %v635_v60 = vadd.f32 %v1351_v58, %v1349_v56  ;;  %p1390_p3 = pnand %p1389_p2, %p1383_p13 }
 0x1ae   : > { %v1355_v61 = vpop.eup %1354 }
 0x1af   : > { %v1357_v62 = vpop.eup %1356  ;;  %636 = vadd.xlane.f32.xlu0 %v635_v60  ;;  %v638_v63 = vadd.f32 %v1355_v61, %v1353_v59 }
 0x1b0   : > { %v1359_v0 = vpop.eup %1358 }
 0x1b1   : > { %v1361_v1 = vpop.eup %1360  ;;  %v647_v2 = vadd.f32 %v1359_v0, %v1357_v62 }
 0x1b2   : > { %v1363_v3 = vpop.eup %1362 }
 0x1b3   : > { %648 = vadd.xlane.f32.xlu0 %v647_v2  ;;  %v650_v4 = vadd.f32 %v1363_v3, %v1361_v1 }
 0x1be   : > { %690 = vperm.xlu1 %1291, %v678_v6  }
 0x1c2   : > { %693 = vperm.xlu1 %1291, %v679_v8  }
 0x1c6   : > { %696 = vperm.xlu1 %1291, %v680_v9  }
 0x1c9   : > { %687 = vperm.xlu0 %1290, %v677_v10  }
 0x1ca   : > { %699 = vperm.xlu1 %1291, %v681_v11  }
 0x1ce   : > { %702 = vperm.xlu1 %1291, %v682_v12  }
 0x1d2   : > { %705 = vperm.xlu1 %1291, %v683_v13  }
 0x1d6   : > { %708 = vperm.xlu1 %1291, %v684_v14  }
 0x1fa   : > { %639 = vadd.xlane.f32.xlu1 %v638_v63 }
 0x1fe   : > { %651 = vadd.xlane.f32.xlu1 %v650_v4 }
 0x231   : > { %834 = vxpose.xlu1.b32.start [1/8] (short) (narrow) %v1477_v5, 8 }
 0x233   : > { %v631_v16 = vpop.xlane.xlu0 %630 }
 0x234   : > { %v653_v18 = vadd.f32 1e-06, %v631_v16 }
 0x235   : > { %835 = vxpose.xlu1.b32.cont [2/8] (short) (narrow) %v1477_v5, 8  ;;  %v634_v22 = vpop.xlane.xlu1 %633 }
 0x236   : > { %1364 = vlog2.f32 %v653_v18  ;;  %v654_v24 = vadd.f32 1e-06, %v634_v22 }
 0x238   : > { %v643_v26 = vpop.xlane.xlu0 %642  ;;  %1366 = vlog2.f32 %v654_v24 }
 0x239   : > { %v657_v28 = vadd.f32 1e-06, %v643_v26  ;;  %836 = vxpose.xlu1.b32.cont [3/8] (short) (narrow) %v1477_v5, 8 }
 0x23a   : > { %v646_v32 = vpop.xlane.xlu1 %645 }
 0x23b   : > { %1368 = vlog2.f32 %v657_v28  ;;  %v658_v34 = vadd.f32 1e-06, %v646_v32 }
 0x23c   : > { %v637_v36 = vpop.xlane.xlu0 %636 }
 0x23d   : > { %1370 = vlog2.f32 %v658_v34  ;;  %v655_v38 = vadd.f32 1e-06, %v637_v36  ;;  %837 = vxpose.xlu1.b32.cont [4/8] (short) (narrow) %v1477_v5, 8 }
 0x23e   : > { %v691_v44 = vpop.permute.xlu1 %690 }
 0x23f   : > { %1372 = vlog2.f32 %v655_v38  ;;  %vm720_vm0 = vcmp.eq.s32.totalorder %v691_v44, %v1769_v48  ;;  %vm721_vm1 = vcmp.eq.s32.totalorder %v691_v44, %v1771_v49 }
 0x240   : > { %v649_v45 = vpop.xlane.xlu0 %648  ;;  %v1365_v46 = vpop.eup %1364 }
 0x241   : > { %v659_v50 = vadd.f32 1e-06, %v649_v45  ;;  %838 = vxpose.xlu1.b32.cont [5/8] (short) (narrow) %v1477_v5, 8  ;;  %v662_v51 = vmul.f32 0.6931472, %v1365_v46 }
 0x242   : > { %v1774_v52 = vpop.permute.xlu1 %693  ;;  %v1367_v53 = vpop.eup %1366 }
 0x243   : > { %1374 = vlog2.f32 %v659_v50  ;;  %v664_v54 = vmul.f32 0.6931472, %v1367_v53  ;;  %v734_v56 = vsub.f32 %v1671_v15, %v662_v51  ;;  %v735_v57 = vsub.f32 %v1678_v7, %v662_v51 }
 0x244   : > { %vm722_vm2 = vcmp.eq.s32.totalorder %v1774_v52, %v1769_v48  ;;  %vm723_vm3 = vcmp.eq.s32.totalorder %v1774_v52, %v1771_v49  ;;  %v1478_v51 = vmov 0.0  }
 0x245   : > { %v1369_v55 = vpop.eup %1368  ;;  %839 = vxpose.xlu1.b32.cont [6/8] (short) (narrow) %v1477_v5, 8  ;;  %v736_v58 = vsub.f32 %v1683_v17, %v664_v54  ;;  %v737_v59 = vsub.f32 %v1688_v19, %v664_v54  ;;  %934 = vmatprep.mubr.f32.mxu1 %v1478_v51 }
 0x246   : > { %v670_v60 = vmul.f32 0.6931472, %v1369_v55  ;;  %v1783_v61 = vpop.permute.xlu1 %696 }
 0x247   : > { %v1371_v62 = vpop.eup %1370  ;;  %vm724_vm4 = vcmp.eq.s32.totalorder %v1783_v61, %v1769_v48  ;;  %vm725_vm5 = vcmp.eq.s32.totalorder %v1783_v61, %v1771_v49  ;;  %v1201_v15 = vpack.c.bf16 %v736_v58, %v734_v56  ;;  %v1198_v63 = vpack.c.bf16 %v737_v59, %v735_v57 }
 0x248   : > { %v672_v7 = vmul.f32 0.6931472, %v1371_v62  ;;  %vm1799_vm6 = vmpackc.low %vm725_vm5, %vm723_vm3  ;;  %v688_v19 = vpop.permute.xlu0 %687  ;;  %v1804_v0 = vsub.f32 %v1693_v21, %v670_v60  ;;  %v1819_v3 = vsub.f32 %v1698_v23, %v670_v60  ;;  %v752_v21 = vsel %vm720_vm0, %v736_v58, 0.0 }
 0x249   : > { %v1373_v1 = vpop.eup %1372  ;;  %vm1812_vm7 = vmpackc.low %vm724_vm4, %vm722_vm2  ;;  %vm718_vm8 = vcmp.eq.s32.totalorder %v688_v19, %v1769_v48  ;;  %vm719_vm9 = vcmp.eq.s32.totalorder %v688_v19, %v1771_v49  ;;  %840 = vxpose.xlu1.b32.cont [7/8] (short) (narrow) %v1477_v5, 8  ;;  %v753_v10 = vsel %vm721_vm1, %v737_v59, 0.0 }
 0x24a   : > { %v666_v4 = vmul.f32 0.6931472, %v1373_v1  ;;  %vm1199_vm10 = vmpackc.low %vm721_vm1, %vm719_vm9  ;;  %v700_v6 = vpop.permute.xlu1 %699  ;;  %v750_v8 = vsel %vm718_vm8, %v734_v56, 0.0  ;;  %v751_v9 = vsel %vm719_vm9, %v735_v57, 0.0  ;;  %v769_v11 = vadd.f32 %v753_v10, %v752_v21 }
 0x24b   : > { %vm1202_vm11 = vmpackc.low %vm720_vm0, %vm718_vm8  ;;  %vm726_vm12 = vcmp.eq.s32.totalorder %v700_v6, %v1769_v48  ;;  %vm727_vm13 = vcmp.eq.s32.totalorder %v700_v6, %v1771_v49  ;;  %1200 = vmatprep.subr.msk.bf16.mxu1 %vm1199_vm10, %v1198_v63  ;;  %v766_v23 = vadd.f32 %v751_v9, %v750_v8  ;;  %v1839_v14 = vsub.f32 %v1703_v25, %v672_v7  ;;  %v790_v8 = vld [vmem:[%s337_s20] sm:$0xff]  ;;  %v792_v9 = vld [vmem:[%s337_s20 + $0x10] sm:$0xff] }
 0x24c   : > { %1203 = vmatpush1.bf16.msk.msra.mxu1 %vm1202_vm11, %v1201_v15  ;;  %v758_v12 = vsel %vm726_vm12, %v1804_v0, 0.0  ;;  %v759_v13 = vsel %vm727_vm13, %v1819_v3, 0.0  ;;  %v745_v16 = vsub.f32 %v1708_v27, %v672_v7  ;;  %v738_v24 = vsub.f32 %v1713_v29, %v666_v4 }
 0x24d   : > { %v1375_v18 = vpop.eup %1374  ;;  %767 = vadd.xlane.f32.xlu0 %v766_v23  ;;  %v778_v22 = vadd.f32 %v759_v13, %v758_v12  ;;  %v739_v26 = vsub.f32 %v1718_v31, %v666_v4  ;;  %841 = vxpose.xlu1.b32.end [8/8] (short) (narrow) %v1477_v5, 8  ;;  %v1213_v36 = vpack.c.bf16 %v1839_v14, %v1804_v0  ;;  %v794_v13 = vld [vmem:[%s337_s20 + $0x20] sm:$0xff] }
 0x24e   : > { %v674_v28 = vmul.f32 0.6931472, %v1375_v18  ;;  %v703_v32 = vpop.permute.xlu1 %702  ;;  %v1210_v34 = vpack.c.bf16 %v745_v16, %v1819_v3  ;;  %v754_v25 = vsel %vm722_vm2, %v738_v24, 0.0 }
 0x24f   : > { %vm728_vm14 = vcmp.eq.s32.totalorder %v703_v32, %v1769_v48  ;;  %vm729_vm15 = vcmp.eq.s32.totalorder %v703_v32, %v1771_v49  ;;  %v755_v27 = vsel %vm723_vm3, %v739_v26, 0.0 }
 0x250   : > { %vm1858_vm0 = vmpackc.low %vm729_vm15, %vm727_vm13  ;;  %v760_v31 = vsel %vm728_vm14, %v1839_v14, 0.0  ;;  %v761_v5 = vsel %vm729_vm15, %v745_v16, 0.0  ;;  %v772_v38 = vadd.f32 %v755_v27, %v754_v25  ;;  %v746_v39 = vsub.f32 %v1733_v37, %v674_v28  ;;  %v793_v14 = vld [vmem:[%s337_s20 + $0x18] sm:$0xff] }
 0x251   : > { %vm1866_vm1 = vmpackc.low %vm728_vm14, %vm726_vm12  ;;  %779 = vadd.xlane.f32.xlu0 %v778_v22  ;;  %v781_v42 = vadd.f32 %v761_v5, %v760_v31  ;;  %v747_v44 = vsub.f32 %v1738_v40, %v674_v28 }
 0x252   : > { %v706_v45 = vpop.permute.xlu1 %705 }
 0x253   : > { %vm730_vm2 = vcmp.eq.s32.totalorder %v706_v45, %v1769_v48  ;;  %vm731_vm3 = vcmp.eq.s32.totalorder %v706_v45, %v1771_v49 }
 0x254   : > { %v762_v46 = vsel %vm730_vm2, %v746_v39, 0.0  ;;  %v763_v37 = vsel %vm731_vm3, %v747_v44, 0.0 }
 0x255   : > { %770 = vadd.xlane.f32.xlu0 %v769_v11  ;;  %v784_v50 = vadd.f32 %v763_v37, %v762_v46 }
 0x256   : > { %v709_v52 = vpop.permute.xlu1 %708 }
 0x257   : > { %vm732_vm8 = vcmp.eq.s32.totalorder %v709_v52, %v1769_v48  ;;  %vm733_vm9 = vcmp.eq.s32.totalorder %v709_v52, %v1771_v49  ;;  %v791_v49 = vld [vmem:[%s337_s20 + $0x8] sm:$0xff] }
 0x259   : > { %782 = vadd.xlane.f32.xlu0 %v781_v42 }
 0x25d   : > { %773 = vadd.xlane.f32.xlu0 %v772_v38 }
 0x287   : > { %v640_v53 = vpop.xlane.xlu1 %639 }
 0x288   : > { %v656_v40 = vadd.f32 1e-06, %v640_v53  ;;  %v1479_v53 = vmov 1966171168  }
 0x28a   : > { %1376 = vlog2.f32 %v656_v40  ;;  %v945_v40 = vunpack.c.l.s4 %v1479_v53 }
 0x28b   : > { %v652_v54 = vpop.xlane.xlu1 %651 }
 0x28c   : > { %v660_v55 = vadd.f32 1e-06, %v652_v54  ;;  %v946_v54 = vunpack.c.0.s8 %v945_v40 }
 0x28e   : > { %1378 = vlog2.f32 %v660_v55 }
 0x294   : > { %v1377_v56 = vpop.eup %1376 }
 0x295   : > { %v668_v57 = vmul.f32 0.6931472, %v1377_v56  ;;  %v949_v56 = vsub.s32 %v946_v54, %v1760_v30 }
 0x297   : > { %v740_v58 = vsub.f32 %v1723_v33, %v668_v57  ;;  %v741_v59 = vsub.f32 %v1728_v35, %v668_v57 }
 0x298   : > { %v1379_v60 = vpop.eup %1378 }
 0x299   : > { %v1207_v62 = vpack.c.bf16 %v740_v58, %v738_v24  ;;  %v676_v15 = vmul.f32 0.6931472, %v1379_v60  ;;  %v1204_v7 = vpack.c.bf16 %v741_v59, %v739_v26  ;;  %v756_v19 = vsel %vm724_vm4, %v740_v58, 0.0  ;;  %vm1217_vm4 = vmpackc.low %vm733_vm9, %vm731_vm3  ;;  %v795_v24 = vld [vmem:[%s337_s20 + $0x28] sm:$0xff] }
 0x29a   : > { %v757_v63 = vsel %vm725_vm5, %v741_v59, 0.0  ;;  %vm1220_vm5 = vmpackc.low %vm732_vm8, %vm730_vm2 }
 0x29b   : > { %v748_v0 = vsub.f32 %v1743_v43, %v676_v15  ;;  %v749_v1 = vsub.f32 %v1748_v47, %v676_v15  ;;  %1206 = vmatprep.subr.msk.bf16.mxu1 %vm1799_vm6, %v1204_v7  ;;  %v775_v33 = vadd.f32 %v757_v63, %v756_v19  ;;  %vm866_vm6 = vcmask 523264  }
 0x29c   : > { %1209 = vmatpush1.bf16.msk.msra.mxu1 %vm1812_vm7, %v1207_v62  ;;  %vm806_vm7 = vcmask 7168  }
 0x29d   : > { %776 = vadd.xlane.f32.xlu0 %v775_v33  ;;  %1212 = vmatprep.subr.msk.bf16.mxu1 %vm1858_vm0, %v1210_v34  ;;  %v1216_v35 = vpack.c.bf16 %v749_v1, %v747_v44  ;;  %v1219_v61 = vpack.c.bf16 %v748_v0, %v746_v39  ;;  %v764_v43 = vsel %vm732_vm8, %v748_v0, 0.0  ;;  %v765_v3 = vsel %vm733_vm9, %v749_v1, 0.0 }
 0x29e   : > { %v787_v47 = vadd.f32 %v765_v3, %v764_v43 }
 0x2a0   : > { %1215 = vmatpush1.bf16.msk.msra.mxu1 %vm1866_vm1, %v1213_v36  ;;  %v796_v36 = vld [vmem:[%s337_s20 + $0x30] sm:$0xff] }
 0x2a1   : > { %785 = vadd.xlane.f32.xlu0 %v784_v50  ;;  %1218 = vmatprep.subr.msk.bf16.mxu1 %vm1217_vm4, %v1216_v35 }
 0x2a4   : > { %1221 = vmatpush1.bf16.msk.msra.mxu1 %vm1220_vm5, %v1219_v61 }
 0x2a5   : > { %788 = vadd.xlane.f32.xlu0 %v787_v47 }
 0x2b1   : > { %v850_v17 = vpop.trf.xlu1 }
 0x2b2   : > { %1185 = vmatmul.mubr.msk.f32.vlgmr.msra.gmra.mrb[8].mxu1 %vm866_vm6, %v850_v17 }
 0x2da   : > { %v768_v2 = vpop.xlane.xlu0 %767 }
 0x2db   : > { %v798_v48 = vmul.f32 %v790_v8, %v768_v2 }
 0x2dd   : > { %v807_v16 = vsel %vm806_vm7, %v798_v48, 0.0 }
 0x2de   : > { %v780_v21 = vpop.xlane.xlu0 %779 }
 0x2df   : > { %v802_v28 = vmul.f32 %v794_v13, %v780_v21 }
 0x2e1   : > { %v814_v5 = vsel %vm806_vm7, %v802_v28, 0.0 }
 0x2e2   : > { %v771_v4 = vpop.xlane.xlu0 %770 }
 0x2e3   : > { %v799_v23 = vmul.f32 %v791_v49, %v771_v4 }
 0x2e5   : > { %v808_v12 = vsel %vm806_vm7, %v799_v23, 0.0 }
 0x2e6   : > { %v783_v6 = vpop.xlane.xlu0 %782  ;;  %v809_v22 = vadd.f32 %v808_v12, %v807_v16 }
 0x2e7   : > { %v803_v25 = vmul.f32 %v795_v24, %v783_v6 }
 0x2e9   : > { %v816_v42 = vsel %vm806_vm7, %v803_v25, 0.0 }
 0x2ea   : > { %v774_v10 = vpop.xlane.xlu0 %773 }
 0x2eb   : > { %v800_v11 = vmul.f32 %v792_v9, %v774_v10 }
 0x2ed   : > { %v810_v18 = vsel %vm806_vm7, %v800_v11, 0.0 }
 0x2ee   : > { %v811_v34 = vadd.f32 %v810_v18, %v809_v22 }
 0x32a   : > { %v777_v26 = vpop.xlane.xlu0 %776 }
 0x32b   : > { %v801_v32 = vmul.f32 %v793_v14, %v777_v26 }
 0x32d   : > { %v812_v27 = vsel %vm806_vm7, %v801_v32, 0.0 }
 0x32e   : > { %v813_v29 = vadd.f32 %v812_v27, %v811_v34  ;;  %v786_v31 = vpop.xlane.xlu0 %785 }
 0x32f   : > { %v804_v38 = vmul.f32 %v796_v36, %v786_v31 }
 0x330   : > { %v815_v39 = vadd.f32 %v814_v5, %v813_v29 }
 0x331   : > { %v818_v46 = vsel %vm806_vm7, %v804_v38, 0.0 }
 0x332   : > { %v789_v44 = vpop.xlane.xlu0 %788  ;;  %v817_v45 = vadd.f32 %v816_v42, %v815_v39 }
 0x333   : > { %v805_v37 = vmul.f32 %v797_v41, %v789_v44 }
 0x334   : > { %v819_v50 = vadd.f32 %v818_v46, %v817_v45 }
 0x335   : > { %v820_v51 = vsel %vm806_vm7, %v805_v37, 0.0 }
 0x336   : > { %v821_v52 = vadd.f32 %v820_v51, %v819_v50 }
 0x338   : > { %822 = vadd.xlane.f32.xlu0 %v821_v52 }
 0x385   : > { %v936_v55 = vpop.f32.mrb[8].mxu1 }
 0x386   : > { %v938_v57 = vpop.f32.mrb[9].mxu1 }
 0x387   : > { %v943_v58 = vcombine.low %v936_v55, %v938_v57 }
 0x388   : > { %1393 = shalt.err (!%p1390_p3)
}
 0x389   : > { %s1394_s19 = scalar_lea.hbm %s1920_s13, 2048  ;;  %s1398_s8 = scalar_lea.hbm %s2008_s5, 8192 }
 0x38a   : > { %p1395_p4 = scmp.ne.s32.totalorder %s1920_s13, %s1394_s19  ;;  %p1399_p9 = scmp.lt.u32.totalorder %s1920_s13, %s2008_s5 }
 0x38b   : > { %p1400_p10 = scmp.lt.u32.totalorder %s1398_s8, %s1394_s19  ;;  %p1402_p12 = scmp.lt.u32.totalorder %s1394_s19, %s1920_s13 }
 0x38c   : > { %p1396_p7 = pnand %p1395_p4, %p1562_p5 }
 0x38d   : > { %p1401_p11 = por %p1400_p10, %p1399_p9 }
 0x38e   : > { %p1397_p8 = pneg %p1396_p7 }
 0x38f   : > { %p1403_p13 = por %p1402_p12, %p1401_p11 }
 0x391   : > { %p1404_p0 = pnand %p1403_p13, %p1397_p8 }
 0x393   : > { %1407 = shalt.err (!%p1404_p0)
}
 0x394   : > { %s1481_s16 = smov 256   ;;  %s1482_s17 = smov 16   ;;  %v950_v30 = vrot.slane %v943_v58, %v949_v56  ;;  %vm961_vm10 = vcmp.lt.s32.totalorder %v710_v20, 256 }
 0x395   : > { %1240 = dma.vmem_to_hbm [thread:$0]  (%p1562_p5), %s1922_s22, 2048, %s1920_s13, %s965_s15, %s1481_s16, %s1481_s16, %s1482_s17  }
 0x396   : > { %s1197_s18 = sshll.u32 %s1545_s28, 5  ;;  %s315_s19 = scalar_lea.vmem [#allocation4], %s1146_s29  ;;  %v957_v59 = vrot.slane %v950_v30, %v949_v56 }
 0x397   : > { %s1004_s20 = sshll.u32 %s315_s19, 4  ;;  %s1955_s14 = scalar_lea.hbm %s2009_s6, %s1197_s18  ;;  %s1957_s20 = int_to_ptr.vmem [resolvable:$true] %s1004_s20 }
 0x398   : > { %963 = vst.msk [vmem:[%s315_s19] sm:$0x3] %vm961_vm10, %v957_v59  ;;  %s970_s22 = scalar_lea.sflag [#allocation5], %s1668_s23  ;;  %s1408_s13 = scalar_lea.vmem %s1957_s20, 32 }
 0x399   : > { %p1409_p1 = scmp.ne.s32.totalorder %s1957_s20, %s1408_s13  ;;  %s1483_s29 = smov [#allocation4]  }
 0x39a   : > { %s1412_s15 = sshll.u32 %s1483_s29, 4  ;;  %s1413_s15 = int_to_ptr.vmem [resolvable:$false] %s1412_s15 }
 0x39b   : > { %p1410_p2 = pnand %p1409_p1, %p1562_p5  ;;  %s1414_s9 = scalar_lea.vmem %s1413_s15, 64 }
 0x39c   : > { %p1415_p4 = scmp.lt.s32.totalorder %s1957_s20, %s1413_s15  ;;  %p1416_p7 = scmp.lt.s32.totalorder %s1414_s9, %s1408_s13 }
 0x39d   : > { %p1411_p3 = pneg %p1410_p2 }
 0x39e   : > { %p1417_p8 = por %p1416_p7, %p1415_p4 }
 0x3a0   : > { %p1418_p9 = pnand %p1417_p8, %p1411_p3 }
 0x3a2   : > { %1421 = shalt.err (!%p1418_p9)
}
 0x3a3   : > { %s1422_s23 = scalar_lea.hbm %s1955_s14, 32  ;;  %s1426_s18 = scalar_lea.hbm %s2009_s6, 128 }
 0x3a4   : > { %p1423_p10 = scmp.ne.s32.totalorder %s1955_s14, %s1422_s23  ;;  %p1427_p13 = scmp.lt.u32.totalorder %s1955_s14, %s2009_s6 }
 0x3a5   : > { %p1428_p0 = scmp.lt.u32.totalorder %s1426_s18, %s1422_s23  ;;  %p1430_p2 = scmp.lt.u32.totalorder %s1422_s23, %s1955_s14 }
 0x3a6   : > { %p1424_p11 = pnand %p1423_p10, %p1562_p5 }
 0x3a7   : > { %p1429_p1 = por %p1428_p0, %p1427_p13 }
 0x3a8   : > { %p1425_p12 = pneg %p1424_p11 }
 0x3a9   : > { %p1431_p3 = por %p1430_p2, %p1429_p1 }
 0x3ab   : > { %p1432_p4 = pnand %p1431_p3, %p1425_p12 }
 0x3ad   : > { %1435 = shalt.err (!%p1432_p4)
}
 0x3ae   : > { %1241 = dma.vmem_to_hbm [thread:$0]  (%p1562_p5), %s1957_s20, 32, %s1955_s14, %s970_s22   ;;  %vm832_vm11 = vcmask 0  }
 0x3af   : > { %p340_p7 = scmp.lt.s32.totalorder %s1545_s28, 3 }
 0x3b1   : > { %s2028_s28 = smov (!%p340_p7, %s1545_s28), 3 }
 0x3b2   : > { %s342_s29 = scalar_lea.vmem %s2010_s7, %s2028_s28 }
 0x3c5   : > { %v823_v20 = vpop.xlane.xlu0 %822 }
 0x3c6   : > { %v824_v60 = vrot.slane %v823_v20, 4 }
 0x3c8   : > { %v825_v62 = vadd.f32 %v824_v60, %v823_v20 }
 0x3ca   : > { %v826_v15 = vrot.slane %v825_v62, 2 }
 0x3cc   : > { %v827_v7 = vadd.f32 %v826_v15, %v825_v62 }
 0x3ce   : > { %v828_v19 = vrot.slane %v827_v7, 1 }
 0x3d0   : > { %v829_v63 = vadd.f32 %v828_v19, %v827_v7 }
 0x3d2   : > { %1238 = vpush %v829_v63 }
 0x403   : > { %s1239_s11 = spop %1238 }
 0x404   : > { %v831_v0 = vstv %s1239_s11 }
 0x405   : > { %833 = vst.msk [vmem:[%s342_s29] sm:$0x1] %vm832_vm11, %v831_v0 }
 0x406 PF: > { %p1251_p5 = scmp.ge.s32.totalorder %s1474_s27, 2  ;;  %s1019_s20 = sand.u32 1, %s1462_s24  }
 0x407   : > { %s1020_s14 = scalar_lea.sflag [#allocation3], %s1019_s20 }
 0x408   : > { %p1245_p8 = pnand %p1251_p5, %p1566_p6 }
 0x40a   : > { %1453 = dma.done.wait (!%p1245_p8), %s1020_s14, 2048  }
 0x40b   : > { %1455 = vsyncadd (!%p1245_p8), %s1020_s14, 4294965248  ;;  %s1029_s22 = scalar_lea.sflag [#allocation5], %s1019_s20 }
 0x40c   : > { %1457 = dma.done.wait (!%p1245_p8), %s1029_s22, 32  }
 0x40d   : > { %1459 = vsyncadd (!%p1245_p8), %s1029_s22, 4294967264  ;;  %p21_p9 = scmp.ge.s32.totalorder %s1549_s30, 6   ;;  %s2021_s24 = smov %s1466_s25 }
 0x40e   : > { %s2022_s25 = smov %s1470_s26  ;;  %s2023_s26 = smov %s1560_s10 }
 0x40f   : > { %s2024_s27 = smov %s1549_s30  ;;  %23 = sbr.rel (!%p21_p9) target bundleno = 5 (0x5), region = 110 }
 0x416   :  { %1040 = vsyncpa [#allocation3], 1 }
 0x417   :  { %1042 = vsyncpa [#allocation3 + $0x1], 1 }
 0x418   :  { %1043 = vsyncpa [#allocation5], 1 }
 0x419   :  { %1045 = vsyncpa [#allocation5 + $0x1], 1 }

</bundles_post_ra>
